<compile_context>
chip_gen: v7x
topology: tpu7x:2x2x1
jax: 0.10.0
libtpu: 0.0.40
codegen_flags: <defaults>
</compile_context>

<pallas_src>
import functools

import jax
import jax.numpy as jnp
import numpy as np
from jax.experimental import pallas as pl
from jax.experimental.pallas import tpu as pltpu

# ---------------- model dimensions (small, consistent with the module) ----------------
B = 2                 # batch
CIN = 3               # OCT images fed to a timm backbone are 3-channel
H = W = 16            # spatial
K = 3                 # conv kernel size of the synthetic backbone stem
KKC = K * K * CIN     # 27 = raw im2col contraction dim
KPAD = 32             # padded contraction dim (col KKC = ones/bias column, rest zero)
NUM_FEATURES = 64     # backbone feature dim (stand-in for resnet50's 2048)
HIDDEN = 128          # head hidden width (nn.Linear(num_features, 128))
NUM_DISEASES = 28     # multi-label head output
HEADS = 2 * HIDDEN    # fused hidden width of both heads
OUT_PAD = 128         # lane-dense fused output width: col 0 = risk, cols 1..28 = labels


def _fused_kernel(patches_ref, wc_ref, pool_ref, w1_ref, w2_ref, b12_ref, out_ref):
    """Whole forward pass in VMEM; every matmul feeds the MXU with bf16 operands / f32 accum."""
    # --- backbone stem: conv3x3-as-matmul (bias folded via the ones column) + ReLU ---
    fm = jnp.dot(patches_ref[...], wc_ref[...], preferred_element_type=jnp.float32)
    fm = jnp.maximum(fm, 0.0)                                   # [B*HW, F] f32

    # --- global average pool as a matmul with the constant pooling matrix (MXU, no XLU reduce) ---
    feat = jnp.dot(pool_ref[...], fm.astype(jnp.bfloat16),
                   preferred_element_type=jnp.float32)          # [B, F] f32

    # --- both heads fused: Linear -> ReLU -> (Dropout = id in eval) -> Linear ---
    b1 = b12_ref[0:1, :]                                        # [1, 2*HIDDEN] f32
    b2 = b12_ref[1:2, 0:OUT_PAD]                                # [1, OUT_PAD]  f32
    h = jnp.dot(feat.astype(jnp.bfloat16), w1_ref[...],
                preferred_element_type=jnp.float32) + b1
    h = jnp.maximum(h, 0.0)                                     # [B, 2*HIDDEN] f32
    out_ref[...] = jnp.dot(h.astype(jnp.bfloat16), w2_ref[...],
                           preferred_element_type=jnp.float32) + b2   # [B, OUT_PAD] f32


def _prepare_patches(x_nchw):
    """NCHW -> NHWC, im2col (padding=1, kh/kw/cin ordering), append ones col, pad to KPAD, bf16."""
    x = jnp.transpose(x_nchw, (0, 2, 3, 1)).astype(jnp.float32)
    xp = jnp.pad(x, ((0, 0), (1, 1), (1, 1), (0, 0)))
    cols = [xp[:, kh:kh + H, kw:kw + W, :] for kh in range(K) for kw in range(K)]
    patches = jnp.concatenate(cols, axis=-1).reshape(B * H * W, KKC)
    ones = jnp.ones((B * H * W, 1), jnp.float32)                       # bias column
    zeros = jnp.zeros((B * H * W, KPAD - KKC - 1), jnp.float32)        # alignment padding
    return jnp.concatenate([patches, ones, zeros], axis=-1).astype(jnp.bfloat16)


@functools.partial(jax.jit, static_argnums=())
def retinal_disease_forward(x_nchw, kp):
    """x_nchw: [B, 3, H, W] float32. Returns (risk [B,1], labels [B, NUM_DISEASES])."""
    patches = _prepare_patches(x_nchw)                                 # [B*HW, KPAD] bf16
    vmem = pl.BlockSpec(memory_space=pltpu.MemorySpace.VMEM)
    out = pl.pallas_call(
        _fused_kernel,
        out_shape=jax.ShapeDtypeStruct((B, OUT_PAD), jnp.float32),
        in_specs=[vmem] * 6,
        out_specs=vmem,
    )(patches, kp["wc"], kp["pool"], kp["w1"], kp["w2"], kp["b12"])
    return out[:, 0:1], out[:, 1:1 + NUM_DISEASES]


# ---------------- parameter construction / packing ----------------

def init_params(key):
    """Per-tensor params, stored as [in_features, out_features] (transposed vs torch nn.Linear)."""
    ks = jax.random.split(key, 10)
    s = 0.05
    wc = (jax.random.normal(ks[0], (K, K, CIN, NUM_FEATURES), jnp.float32) * s
          ).reshape(KKC, NUM_FEATURES)
    return {
        "wc": wc,
        "bc": jax.random.normal(ks[1], (1, NUM_FEATURES), jnp.float32) * s,
        # disease_risk_head: Linear(F,128) -> ReLU -> Dropout -> Linear(128,1)
        "w1r": jax.random.normal(ks[2], (NUM_FEATURES, HIDDEN), jnp.float32) * s,
        "b1r": jax.random.normal(ks[3], (1, HIDDEN), jnp.float32) * s,
        "w2r": jax.random.normal(ks[4], (HIDDEN, 1), jnp.float32) * s,
        "b2r": jax.random.normal(ks[5], (1, 1), jnp.float32) * s,
        # disease_classification_head: Linear(F,128) -> ReLU -> Dropout -> Linear(128,28)
        "w1c": jax.random.normal(ks[6], (NUM_FEATURES, HIDDEN), jnp.float32) * s,
        "b1c": jax.random.normal(ks[7], (1, HIDDEN), jnp.float32) * s,
        "w2c": jax.random.normal(ks[8], (HIDDEN, NUM_DISEASES), jnp.float32) * s,
        "b2c": jax.random.normal(ks[9], (1, NUM_DISEASES), jnp.float32) * s,
    }


def pack_params(p):
    """Fuse/pad parameters into the 6 kernel inputs (done once, outside the hot path)."""
    # conv weight + bias row, padded to KPAD contraction rows
    wc = jnp.zeros((KPAD, NUM_FEATURES), jnp.float32)
    wc = wc.at[:KKC, :].set(p["wc"])
    wc = wc.at[KKC, :].set(p["bc"][0])           # multiplied by the ones column of the patches

    # constant global-average-pool matrix: row b averages that batch's HW rows
    pool = jnp.kron(jnp.eye(B, dtype=jnp.float32),
                    jnp.ones((1, H * W), jnp.float32)) / float(H * W)

    # fused first head layer: [F, 2*HIDDEN]
    w1 = jnp.concatenate([p["w1r"], p["w1c"]], axis=1)
    b1 = jnp.concatenate([p["b1r"], p["b1c"]], axis=1)

    # block-diagonal second layer -> lane-dense [2*HIDDEN, OUT_PAD]
    w2 = jnp.zeros((HEADS, OUT_PAD), jnp.float32)
    w2 = w2.at[:HIDDEN, 0:1].set(p["w2r"])
    w2 = w2.at[HIDDEN:, 1:1 + NUM_DISEASES].set(p["w2c"])

    b2 = jnp.zeros((1, OUT_PAD), jnp.float32)
    b2 = b2.at[:, 0:1].set(p["b2r"])
    b2 = b2.at[:, 1:1 + NUM_DISEASES].set(p["b2c"])

    # pack both biases into one f32 array: row 0 = b1, row 1 (cols 0:OUT_PAD) = b2
    b12 = jnp.zeros((2, HEADS), jnp.float32)
    b12 = b12.at[0:1, :].set(b1)
    b12 = b12.at[1:2, :OUT_PAD].set(b2)

    bf16 = jnp.bfloat16
    return {
        "wc": wc.astype(bf16),
        "pool": pool.astype(bf16),    # 1/256 is exact in bf16
        "w1": w1.astype(bf16),
        "w2": w2.astype(bf16),
        "b12": b12,                   # biases stay f32 (added to f32 accumulators)
    }


# ---------------- pure-JAX reference (mirrors the kernel's bf16 quantization) ----------------

def reference_forward(x_nchw, kp):
    hp = jax.lax.Precision.HIGHEST
    f32 = lambda a: a.astype(jnp.float32)
    q = lambda a: a.astype(jnp.bfloat16).astype(jnp.float32)

    patches = f32(_prepare_patches(x_nchw))
    fm = jnp.maximum(jnp.dot(patches, f32(kp["wc"]), precision=hp), 0.0)
    feat = jnp.dot(f32(kp["pool"]), q(fm), precision=hp)
    b1 = kp["b12"][0:1, :]
    b2 = kp["b12"][1:2, :OUT_PAD]
    h = jnp.maximum(jnp.dot(q(feat), f32(kp["w1"]), precision=hp) + b1, 0.0)
    out = jnp.dot(q(h), f32(kp["w2"]), precision=hp) + b2
    return out[:, 0:1], out[:, 1:1 + NUM_DISEASES]


if __name__ == "__main__":
    key = jax.random.PRNGKey(0)
    k_x, k_p = jax.random.split(key)
    x = jax.random.normal(k_x, (B, CIN, H, W), jnp.float32)   # NCHW, like the torch module
    params = init_params(k_p)
    kp = pack_params(params)

    risk, labels = jax.block_until_ready(retinal_disease_forward(x, kp))
    risk_ref, labels_ref = reference_forward(x, kp)

    assert risk.shape == (B, 1) and labels.shape == (B, NUM_DISEASES)
    # tolerance covers bf16 rounding of intermediates + MXU accumulation-order differences
    np.testing.assert_allclose(np.asarray(risk), np.asarray(risk_ref), rtol=2e-2, atol=1e-2)
    np.testing.assert_allclose(np.asarray(labels), np.asarray(labels_ref), rtol=2e-2, atol=1e-2)
    print("KERNEL_OK")
</pallas_src>

<mosaic_0001>
module attributes {stable_mosaic.version = 11 : i64} {
  func.func @_fused_kernel(%arg0: memref<512x32xbf16, #tpu.memory_space<vmem>>, %arg1: memref<32x64xbf16, #tpu.memory_space<vmem>>, %arg2: memref<2x512xbf16, #tpu.memory_space<vmem>>, %arg3: memref<64x256xbf16, #tpu.memory_space<vmem>>, %arg4: memref<256x128xbf16, #tpu.memory_space<vmem>>, %arg5: memref<2x256xf32, #tpu.memory_space<vmem>>, %arg6: memref<2x128xf32, #tpu.memory_space<vmem>>) attributes {dimension_semantics = [], scalar_prefetch = 0 : i64, scratch_operands = 0 : i64, tpu.core_type = #tpu.core_type<tc>} {
    %c0 = arith.constant 0 : index
    %c0_0 = arith.constant 0 : index
    %0 = vector.load %arg0[%c0, %c0_0] : memref<512x32xbf16, #tpu.memory_space<vmem>>, vector<512x32xbf16>
    %c0_1 = arith.constant 0 : index
    %c0_2 = arith.constant 0 : index
    %1 = vector.load %arg1[%c0_1, %c0_2] : memref<32x64xbf16, #tpu.memory_space<vmem>>, vector<32x64xbf16>
    %cst = arith.constant dense<0.000000e+00> : vector<512x64xf32>
    %2 = tpu.matmul %0, %1, %cst {dimension_numbers = #tpu.dot_dimension_numbers<[1], [0], [0], [1], [0, 0, 1, 1], [], []>} : vector<512x32xbf16>, vector<32x64xbf16>, vector<512x64xf32> -> vector<512x64xf32>
    %cst_3 = arith.constant 0.000000e+00 : f32
    %3 = vector.broadcast %cst_3 : f32 to vector<512x64xf32>
    %4 = arith.maximumf %2, %3 : vector<512x64xf32>
    %c0_4 = arith.constant 0 : index
    %c0_5 = arith.constant 0 : index
    %5 = vector.load %arg2[%c0_4, %c0_5] : memref<2x512xbf16, #tpu.memory_space<vmem>>, vector<2x512xbf16>
    %6 = arith.truncf %4 : vector<512x64xf32> to vector<512x64xbf16>
    %cst_6 = arith.constant dense<0.000000e+00> : vector<2x64xf32>
    %7 = tpu.matmul %5, %6, %cst_6 {dimension_numbers = #tpu.dot_dimension_numbers<[1], [0], [0], [1], [0, 0, 1, 1], [], []>} : vector<2x512xbf16>, vector<512x64xbf16>, vector<2x64xf32> -> vector<2x64xf32>
    %c0_7 = arith.constant 0 : index
    %c0_8 = arith.constant 0 : index
    %8 = vector.load %arg5[%c0_7, %c0_8] : memref<2x256xf32, #tpu.memory_space<vmem>>, vector<1x256xf32>
    %c1 = arith.constant 1 : index
    %c0_9 = arith.constant 0 : index
    %9 = vector.load %arg5[%c1, %c0_9] : memref<2x256xf32, #tpu.memory_space<vmem>>, vector<1x128xf32>
    %10 = arith.truncf %7 : vector<2x64xf32> to vector<2x64xbf16>
    %c0_10 = arith.constant 0 : index
    %c0_11 = arith.constant 0 : index
    %11 = vector.load %arg3[%c0_10, %c0_11] : memref<64x256xbf16, #tpu.memory_space<vmem>>, vector<64x256xbf16>
    %cst_12 = arith.constant dense<0.000000e+00> : vector<2x256xf32>
    %12 = tpu.matmul %10, %11, %cst_12 {dimension_numbers = #tpu.dot_dimension_numbers<[1], [0], [0], [1], [0, 0, 1, 1], [], []>} : vector<2x64xbf16>, vector<64x256xbf16>, vector<2x256xf32> -> vector<2x256xf32>
    %13 = vector.broadcast %8 : vector<1x256xf32> to vector<2x256xf32>
    %14 = arith.addf %12, %13 : vector<2x256xf32>
    %cst_13 = arith.constant 0.000000e+00 : f32
    %15 = vector.broadcast %cst_13 : f32 to vector<2x256xf32>
    %16 = arith.maximumf %14, %15 : vector<2x256xf32>
    %17 = arith.truncf %16 : vector<2x256xf32> to vector<2x256xbf16>
    %c0_14 = arith.constant 0 : index
    %c0_15 = arith.constant 0 : index
    %18 = vector.load %arg4[%c0_14, %c0_15] : memref<256x128xbf16, #tpu.memory_space<vmem>>, vector<256x128xbf16>
    %cst_16 = arith.constant dense<0.000000e+00> : vector<2x128xf32>
    %19 = tpu.matmul %17, %18, %cst_16 {dimension_numbers = #tpu.dot_dimension_numbers<[1], [0], [0], [1], [0, 0, 1, 1], [], []>} : vector<2x256xbf16>, vector<256x128xbf16>, vector<2x128xf32> -> vector<2x128xf32>
    %20 = vector.broadcast %9 : vector<1x128xf32> to vector<2x128xf32>
    %21 = arith.addf %19, %20 : vector<2x128xf32>
    %c0_17 = arith.constant 0 : index
    %c0_18 = arith.constant 0 : index
    %22 = vector.load %arg6[%c0_17, %c0_18] : memref<2x128xf32, #tpu.memory_space<vmem>>, vector<2x128xf32>
    tpu.vector_store %arg6[%c0_17, %c0_18], %21 {strides = array<i32>} : memref<2x128xf32, #tpu.memory_space<vmem>>, vector<2x128xf32>,
    return
  }
}

</mosaic_0001>

<bundles_post_ra>
// kernel: retinal_disease_forward.1
= control target key start
LH: loop header
LB: loop body
LE: loop exit
PB: predicated region body
PF: predicated region fallthrough
CT: control target
= control target key end

     0   :  { %vm264_vm0 = vcmask 261120   ;;  %v1469_v34 = vmov 1966171168   ;;  %v759_v36 = vlaneseq  ;;  %vm918_vm1 = vcmask 523264   ;;  %s1742_s1 = inlined_call_operand.vmem [shape: bf16[32,64], index: 1, kind: input, shape index: {}]   ;;  %s1743_s0 = inlined_call_operand.vmem [shape: bf16[512,32], index: 0, kind: input, shape index: {}]   ;;  %s1744_s2 = inlined_call_operand.vmem [shape: bf16[2,512], index: 2, kind: input, shape index: {}]   ;;  %s1745_s3 = inlined_call_operand.vmem [shape: bf16[64,256], index: 3, kind: input, shape index: {}]   ;;  %s1746_s4 = inlined_call_operand.vmem [shape: bf16[256,128], index: 4, kind: input, shape index: {}]   ;;  %s1747_s5 = inlined_call_operand.vmem [shape: f32[2,256], index: 5, kind: input, shape index: {}]   ;;  %s1748_s6 = inlined_call_operand.vmem [shape: f32[2,128], index: 6, kind: output, shape index: {}]  }
   0x1   :  { %v1407_v0 = vld [vmem:[%s1742_s1] sm:$0xff]   ;;  %v1408_v1 = vld [vmem:[%s1742_s1 + $0x8] sm:$0xff]   ;;  %v1411_v4 = vld [vmem:[%s1743_s0 + $0x10] sm:$0xff]   ;;  %v757_v35 = vunpack.c.l.s4 %v1469_v34 }
   0x2   :  { %1337 = vmatprep.subr.bf16.mxu0 %v1407_v0  ;;  %v1409_v2 = vld [vmem:[%s1743_s0] sm:$0xff]   ;;  %v1410_v3 = vld [vmem:[%s1743_s0 + $0x8] sm:$0xff]   ;;  %v1412_v5 = vld [vmem:[%s1743_s0 + $0x18] sm:$0xff]   ;;  %v1640_v38 = vshrl.u32 %v759_v36, 7 }
   0x3   :  { %1338 = vmatpush3.bf16.msra.mxu0 %v1407_v0  ;;  %1341 = vmatprep.mubr.msk.bf16.mxu0 %vm264_vm0, %v1409_v2  ;;  %v1413_v6 = vld [vmem:[%s1743_s0 + $0x20] sm:$0xff]   ;;  %v1414_v7 = vld [vmem:[%s1743_s0 + $0x28] sm:$0xff]   ;;  %v1415_v8 = vld [vmem:[%s1743_s0 + $0x30] sm:$0xff]   ;;  %v758_v37 = vunpack.c.0.s8 %v757_v35 }
   0x4   :  { %1339 = vmatprep.subr.bf16.mxu0 %v1408_v1  ;;  %v1416_v9 = vld [vmem:[%s1743_s0 + $0x38] sm:$0xff]   ;;  %v1417_v10 = vld [vmem:[%s1743_s0 + $0x40] sm:$0xff]   ;;  %v1418_v11 = vld [vmem:[%s1743_s0 + $0x48] sm:$0xff]  }
   0x5   :  { %v1419_v12 = vld [vmem:[%s1743_s0 + $0x50] sm:$0xff]   ;;  %v1420_v13 = vld [vmem:[%s1743_s0 + $0x58] sm:$0xff]   ;;  %v1421_v14 = vld [vmem:[%s1743_s0 + $0x60] sm:$0xff]   ;;  %v761_v41 = vsub.s32 %v758_v37, %v1640_v38 }
   0x6   :  { %v1422_v15 = vld [vmem:[%s1743_s0 + $0x68] sm:$0xff]   ;;  %v1423_v16 = vld [vmem:[%s1743_s0 + $0x70] sm:$0xff]   ;;  %v1424_v17 = vld [vmem:[%s1743_s0 + $0x78] sm:$0xff]  }
   0x7   :  { %1340 = vmatpush3.bf16.msra.mxu0 %v1408_v1  ;;  %v1425_v18 = vld [vmem:[%s1743_s0 + $0x80] sm:$0xff]   ;;  %v1426_v19 = vld [vmem:[%s1743_s0 + $0x88] sm:$0xff]   ;;  %v1427_v20 = vld [vmem:[%s1743_s0 + $0x90] sm:$0xff]  }
   0x8   :  { %v1428_v21 = vld [vmem:[%s1743_s0 + $0x98] sm:$0xff]   ;;  %v1429_v22 = vld [vmem:[%s1743_s0 + $0xa0] sm:$0xff]   ;;  %v1430_v23 = vld [vmem:[%s1743_s0 + $0xa8] sm:$0xff]  }
   0x9   :  { %v1431_v24 = vld [vmem:[%s1743_s0 + $0xb0] sm:$0xff]   ;;  %v1432_v25 = vld [vmem:[%s1743_s0 + $0xb8] sm:$0xff]   ;;  %v1433_v26 = vld [vmem:[%s1743_s0 + $0xc0] sm:$0xff]  }
   0xa   :  { %1342 = vmatmul.mubr.msk.bf16.vlgmr.msra.gmra.mrb[0].mxu0 %vm264_vm0, %v1410_v3  ;;  %v1434_v27 = vld [vmem:[%s1743_s0 + $0xc8] sm:$0xff]   ;;  %v1435_v28 = vld [vmem:[%s1743_s0 + $0xd0] sm:$0xff]   ;;  %v1436_v29 = vld [vmem:[%s1743_s0 + $0xd8] sm:$0xff]  }
   0xb   :  { %1345 = vmatprep.mubr.msk.bf16.mxu0 %vm264_vm0, %v1411_v4  ;;  %v1437_v30 = vld [vmem:[%s1743_s0 + $0xe0] sm:$0xff]   ;;  %v1438_v31 = vld [vmem:[%s1743_s0 + $0xe8] sm:$0xff]   ;;  %v1439_v32 = vld [vmem:[%s1743_s0 + $0xf0] sm:$0xff]  }
   0xc   :  { %v1440_v33 = vld [vmem:[%s1743_s0 + $0xf8] sm:$0xff]   ;;  %v1210_v39 = vld.sshfl [vmem:[%s1744_s2] sm:$0x33 pattern:$0x75316420] }
   0xd   :  { %v755_v40 = vcombine.high %v1210_v39, %v1210_v39  ;;  %v1648_v43 = vrot.slane %v1210_v39, %v761_v41 }
   0xf   :  { %v1646_v42 = vrot.slane %v755_v40, %v761_v41 }
  0x11   :  { %808 = vmatprep.mubr.bf16.mxu1 %v1646_v42 }
  0x12   :  { %1346 = vmatmul.mubr.msk.bf16.gmra.mrb[4].mxu0 %vm264_vm0, %v1412_v5 }
  0x13   :  { %1349 = vmatprep.mubr.msk.bf16.mxu0 %vm264_vm0, %v1413_v6 }
  0x1a   :  { %1350 = vmatmul.mubr.msk.bf16.gmra.mrb[8].mxu0 %vm264_vm0, %v1414_v7 }
  0x1b   :  { %1353 = vmatprep.mubr.msk.bf16.mxu0 %vm264_vm0, %v1415_v8 }
  0x22   :  { %1354 = vmatmul.mubr.msk.bf16.gmra.mrb[12].mxu0 %vm264_vm0, %v1416_v9 }
  0x23   :  { %1357 = vmatprep.mubr.msk.bf16.mxu0 %vm264_vm0, %v1417_v10 }
  0x2a   :  { %1358 = vmatmul.mubr.msk.bf16.gmra.mrb[16].mxu0 %vm264_vm0, %v1418_v11 }
  0x2b   :  { %1361 = vmatprep.mubr.msk.bf16.mxu0 %vm264_vm0, %v1419_v12 }
  0x32   :  { %1362 = vmatmul.mubr.msk.bf16.gmra.mrb[20].mxu0 %vm264_vm0, %v1420_v13 }
  0x33   :  { %1365 = vmatprep.mubr.msk.bf16.mxu0 %vm264_vm0, %v1421_v14 }
  0x3a   :  { %1366 = vmatmul.mubr.msk.bf16.gmra.mrb[24].mxu0 %vm264_vm0, %v1422_v15 }
  0x3b   :  { %1369 = vmatprep.mubr.msk.bf16.mxu0 %vm264_vm0, %v1423_v16 }
  0x42   :  { %1370 = vmatmul.mubr.msk.bf16.gmra.mrb[28].mxu0 %vm264_vm0, %v1424_v17 }
  0x43   :  { %1373 = vmatprep.mubr.msk.bf16.mxu0 %vm264_vm0, %v1425_v18 }
  0x4a   :  { %1374 = vmatmul.mubr.msk.bf16.gmra.mrb[32].mxu0 %vm264_vm0, %v1426_v19 }
  0x4b   :  { %1377 = vmatprep.mubr.msk.bf16.mxu0 %vm264_vm0, %v1427_v20 }
  0x52   :  { %1378 = vmatmul.mubr.msk.bf16.gmra.mrb[36].mxu0 %vm264_vm0, %v1428_v21 }
  0x53   :  { %1381 = vmatprep.mubr.msk.bf16.mxu0 %vm264_vm0, %v1429_v22 }
  0x5a   :  { %1382 = vmatmul.mubr.msk.bf16.gmra.mrb[40].mxu0 %vm264_vm0, %v1430_v23 }
  0x5b   :  { %1385 = vmatprep.mubr.msk.bf16.mxu0 %vm264_vm0, %v1431_v24 }
  0x62   :  { %1386 = vmatmul.mubr.msk.bf16.gmra.mrb[44].mxu0 %vm264_vm0, %v1432_v25 }
  0x63   :  { %1389 = vmatprep.mubr.msk.bf16.mxu0 %vm264_vm0, %v1433_v26 }
  0x6a   :  { %1390 = vmatmul.mubr.msk.bf16.gmra.mrb[48].mxu0 %vm264_vm0, %v1434_v27 }
  0x6b   :  { %1393 = vmatprep.mubr.msk.bf16.mxu0 %vm264_vm0, %v1435_v28 }
  0x72   :  { %1394 = vmatmul.mubr.msk.bf16.gmra.mrb[52].mxu0 %vm264_vm0, %v1436_v29 }
  0x73   :  { %1397 = vmatprep.mubr.msk.bf16.mxu0 %vm264_vm0, %v1437_v30 }
  0x7a   :  { %1398 = vmatmul.mubr.msk.bf16.gmra.mrb[56].mxu0 %vm264_vm0, %v1438_v31 }
  0x7b   :  { %1401 = vmatprep.mubr.msk.bf16.mxu0 %vm264_vm0, %v1439_v32 }
  0x82   :  { %1402 = vmatmul.mubr.msk.bf16.gmra.mrb[60].mxu0 %vm264_vm0, %v1440_v33 }
  0xdd   :  { %v1343_v44 = vpop.f32.mrb[0].mxu0 }
  0xde   :  { %v395_v45 = vpop.f32.mrb[1].mxu0  ;;  %v652_v47 = vmax.f32 %v1343_v44, 0.0 }
  0xdf   :  { %v1344_v46 = vpop.f32.mrb[2].mxu0  ;;  %v650_v50 = vmax.f32 %v395_v45, 0.0 }
  0xe0   :  { %v653_v48 = vmax.f32 %v1344_v46, 0.0  ;;  %v398_v49 = vpop.f32.mrb[3].mxu0 }
  0xe1   :  { %v651_v51 = vmax.f32 %v398_v49, 0.0 }
  0xe2   :  { %v716_v52 = vpack.c.bf16 %v653_v48, %v652_v47 }
  0xe3   :  { %v715_v53 = vpack.c.bf16 %v651_v51, %v650_v50 }
  0xe5   :  { %v1347_v54 = vpop.f32.mrb[4].mxu0 }
  0xe6   :  { %v411_v55 = vpop.f32.mrb[5].mxu0  ;;  %v656_v57 = vmax.f32 %v1347_v54, 0.0 }
  0xe7   :  { %v1348_v56 = vpop.f32.mrb[6].mxu0  ;;  %v654_v60 = vmax.f32 %v411_v55, 0.0 }
  0xe8   :  { %v657_v58 = vmax.f32 %v1348_v56, 0.0  ;;  %v414_v59 = vpop.f32.mrb[7].mxu0 }
  0xe9   :  { %v655_v61 = vmax.f32 %v414_v59, 0.0 }
  0xea   :  { %v718_v62 = vpack.c.bf16 %v657_v58, %v656_v57 }
  0xeb   :  { %v717_v63 = vpack.c.bf16 %v655_v61, %v654_v60 }
  0xed   :  { %v1351_v0 = vpop.f32.mrb[8].mxu0 }
  0xee   :  { %v427_v1 = vpop.f32.mrb[9].mxu0  ;;  %v660_v3 = vmax.f32 %v1351_v0, 0.0 }
  0xef   :  { %v1352_v2 = vpop.f32.mrb[10].mxu0  ;;  %v658_v6 = vmax.f32 %v427_v1, 0.0 }
  0xf0   :  { %v661_v4 = vmax.f32 %v1352_v2, 0.0  ;;  %v430_v5 = vpop.f32.mrb[11].mxu0 }
  0xf1   :  { %v659_v7 = vmax.f32 %v430_v5, 0.0 }
  0xf2   :  { %v720_v8 = vpack.c.bf16 %v661_v4, %v660_v3 }
  0xf3   :  { %v719_v9 = vpack.c.bf16 %v659_v7, %v658_v6 }
  0xf5   :  { %v1355_v10 = vpop.f32.mrb[12].mxu0 }
  0xf6   :  { %v443_v11 = vpop.f32.mrb[13].mxu0  ;;  %v664_v13 = vmax.f32 %v1355_v10, 0.0 }
  0xf7   :  { %v1356_v12 = vpop.f32.mrb[14].mxu0  ;;  %v662_v16 = vmax.f32 %v443_v11, 0.0 }
  0xf8   :  { %v665_v14 = vmax.f32 %v1356_v12, 0.0  ;;  %v446_v15 = vpop.f32.mrb[15].mxu0 }
  0xf9   :  { %v663_v17 = vmax.f32 %v446_v15, 0.0 }
  0xfa   :  { %v1651_v18 = vpack.c.bf16 %v665_v14, %v664_v13 }
  0xfb   :  { %v721_v19 = vpack.c.bf16 %v663_v17, %v662_v16 }
  0xfd   :  { %v1359_v20 = vpop.f32.mrb[16].mxu0 }
  0xfe   :  { %v459_v21 = vpop.f32.mrb[17].mxu0  ;;  %v668_v23 = vmax.f32 %v1359_v20, 0.0 }
  0xff   :  { %v1360_v22 = vpop.f32.mrb[18].mxu0  ;;  %v666_v26 = vmax.f32 %v459_v21, 0.0 }
 0x100   :  { %v669_v24 = vmax.f32 %v1360_v22, 0.0  ;;  %v462_v25 = vpop.f32.mrb[19].mxu0 }
 0x101   :  { %v667_v27 = vmax.f32 %v462_v25, 0.0 }
 0x102   :  { %v724_v28 = vpack.c.bf16 %v669_v24, %v668_v23 }
 0x103   :  { %v723_v29 = vpack.c.bf16 %v667_v27, %v666_v26 }
 0x105   :  { %v1363_v30 = vpop.f32.mrb[20].mxu0  ;;  %1271 = vmatprep.subr.bf16.mxu1 %v723_v29 }
 0x106   :  { %v475_v31 = vpop.f32.mrb[21].mxu0  ;;  %1272 = vmatpush3.bf16.msra.mxu1 %v715_v53  ;;  %v672_v33 = vmax.f32 %v1363_v30, 0.0 }
 0x107   :  { %v1364_v32 = vpop.f32.mrb[22].mxu0  ;;  %1273 = vmatprep.subr.bf16.mxu1 %v724_v28  ;;  %v670_v36 = vmax.f32 %v475_v31, 0.0 }
 0x108   :  { %v673_v34 = vmax.f32 %v1364_v32, 0.0  ;;  %v478_v35 = vpop.f32.mrb[23].mxu0 }
 0x109   :  { %v671_v37 = vmax.f32 %v478_v35, 0.0 }
 0x10a   :  { %v726_v39 = vpack.c.bf16 %v673_v34, %v672_v33  ;;  %1274 = vmatpush3.bf16.msra.mxu1 %v716_v52 }
 0x10b   :  { %v725_v40 = vpack.c.bf16 %v671_v37, %v670_v36 }
 0x10d   :  { %v1367_v41 = vpop.f32.mrb[24].mxu0  ;;  %1275 = vmatprep.subr.bf16.mxu1 %v725_v40 }
 0x10e   :  { %v491_v44 = vpop.f32.mrb[25].mxu0  ;;  %1276 = vmatpush3.bf16.msra.mxu1 %v717_v63  ;;  %v676_v46 = vmax.f32 %v1367_v41, 0.0 }
 0x10f   :  { %v1368_v45 = vpop.f32.mrb[26].mxu0  ;;  %1277 = vmatprep.subr.bf16.mxu1 %v726_v39  ;;  %v674_v49 = vmax.f32 %v491_v44, 0.0 }
 0x110   :  { %v677_v47 = vmax.f32 %v1368_v45, 0.0  ;;  %v494_v48 = vpop.f32.mrb[27].mxu0 }
 0x111   :  { %v675_v50 = vmax.f32 %v494_v48, 0.0 }
 0x112   :  { %v728_v51 = vpack.c.bf16 %v677_v47, %v676_v46  ;;  %1278 = vmatpush3.bf16.msra.mxu1 %v718_v62 }
 0x113   :  { %v727_v53 = vpack.c.bf16 %v675_v50, %v674_v49 }
 0x115   :  { %v1371_v54 = vpop.f32.mrb[28].mxu0  ;;  %1279 = vmatprep.subr.bf16.mxu1 %v727_v53 }
 0x116   :  { %v507_v55 = vpop.f32.mrb[29].mxu0  ;;  %1280 = vmatpush3.bf16.msra.mxu1 %v719_v9  ;;  %v680_v56 = vmax.f32 %v1371_v54, 0.0  ;;  %v771_v9 = vcombine.high %v1646_v42, %v1646_v42 }
 0x117   :  { %v1372_v52 = vpop.f32.mrb[30].mxu0  ;;  %1281 = vmatprep.subr.bf16.mxu1 %v728_v51  ;;  %v678_v59 = vmax.f32 %v507_v55, 0.0 }
 0x118   :  { %v681_v57 = vmax.f32 %v1372_v52, 0.0  ;;  %v510_v58 = vpop.f32.mrb[31].mxu0 }
 0x119   :  { %v679_v60 = vmax.f32 %v510_v58, 0.0 }
 0x11a   :  { %v730_v61 = vpack.c.bf16 %v681_v57, %v680_v56  ;;  %1282 = vmatpush3.bf16.msra.mxu1 %v720_v8 }
 0x11b   :  { %v729_v63 = vpack.c.bf16 %v679_v60, %v678_v59 }
 0x11d   :  { %v1375_v0 = vpop.f32.mrb[32].mxu0  ;;  %1283 = vmatprep.subr.bf16.mxu1 %v729_v63 }
 0x11e   :  { %v523_v1 = vpop.f32.mrb[33].mxu0  ;;  %1284 = vmatpush3.bf16.msra.mxu1 %v721_v19  ;;  %v684_v2 = vmax.f32 %v1375_v0, 0.0 }
 0x11f   :  { %v1376_v62 = vpop.f32.mrb[34].mxu0  ;;  %1285 = vmatprep.subr.bf16.mxu1 %v730_v61  ;;  %v682_v5 = vmax.f32 %v523_v1, 0.0 }
 0x120   :  { %v685_v3 = vmax.f32 %v1376_v62, 0.0  ;;  %v526_v4 = vpop.f32.mrb[35].mxu0 }
 0x121   :  { %v683_v6 = vmax.f32 %v526_v4, 0.0 }
 0x122   :  { %v732_v7 = vpack.c.bf16 %v685_v3, %v684_v2  ;;  %1286 = vmatpush3.bf16.msra.mxu1 %v1651_v18 }
 0x123   :  { %v731_v10 = vpack.c.bf16 %v683_v6, %v682_v5 }
 0x125   :  { %v1379_v8 = vpop.f32.mrb[36].mxu0  ;;  %809 = vmatmul.mubr.bf16.vlgmr.msra.gmra.mrb[0].mxu1 %v1648_v43 }
 0x126   :  { %v539_v11 = vpop.f32.mrb[37].mxu0  ;;  %848 = vmatprep.mubr.bf16.mxu1 %v771_v9  ;;  %v688_v13 = vmax.f32 %v1379_v8, 0.0 }
 0x127   :  { %v1380_v12 = vpop.f32.mrb[38].mxu0  ;;  %v686_v16 = vmax.f32 %v539_v11, 0.0 }
 0x128   :  { %v689_v14 = vmax.f32 %v1380_v12, 0.0  ;;  %v542_v15 = vpop.f32.mrb[39].mxu0 }
 0x129   :  { %v687_v17 = vmax.f32 %v542_v15, 0.0 }
 0x12a   :  { %v734_v19 = vpack.c.bf16 %v689_v14, %v688_v13 }
 0x12b   :  { %v733_v20 = vpack.c.bf16 %v687_v17, %v686_v16 }
 0x12d   :  { %v1383_v21 = vpop.f32.mrb[40].mxu0 }
 0x12e   :  { %v555_v22 = vpop.f32.mrb[41].mxu0  ;;  %v692_v23 = vmax.f32 %v1383_v21, 0.0  ;;  %v1443_v21 = vld [vmem:[%s1745_s3 + $0x4] ss:$8 sps:$4 sm:$0xff]  }
 0x12f   :  { %v1384_v18 = vpop.f32.mrb[42].mxu0  ;;  %v690_v25 = vmax.f32 %v555_v22, 0.0  ;;  %v1446_v22 = vld [vmem:[%s1745_s3 + $0x14] ss:$8 sps:$4 sm:$0xff]  }
 0x130   :  { %v693_v24 = vmax.f32 %v1384_v18, 0.0  ;;  %v558_v42 = vpop.f32.mrb[43].mxu0  ;;  %v1449_v18 = vld [vmem:[%s1745_s3 + $0x24] ss:$8 sps:$4 sm:$0xff]  }
 0x131   :  { %v691_v26 = vmax.f32 %v558_v42, 0.0  ;;  %v1450_v42 = vld [vmem:[%s1745_s3 + $0x30] ss:$8 sps:$4 sm:$0xff]  }
 0x132   :  { %v736_v27 = vpack.c.bf16 %v693_v24, %v692_v23  ;;  %v1447_v23 = vld [vmem:[%s1745_s3 + $0x20] ss:$8 sps:$4 sm:$0xff]   ;;  %v1452_v24 = vld [vmem:[%s1745_s3 + $0x34] ss:$8 sps:$4 sm:$0xff]  }
 0x133   :  { %v735_v28 = vpack.c.bf16 %v691_v26, %v690_v25  ;;  %v1470_v25 = vmov 0   ;;  %v1453_v26 = vld [vmem:[%s1746_s4 + $0x40] sm:$0xff]  }
 0x135   :  { %v1387_v29 = vpop.f32.mrb[44].mxu0 }
 0x136   :  { %v571_v30 = vpop.f32.mrb[45].mxu0  ;;  %v696_v32 = vmax.f32 %v1387_v29, 0.0 }
 0x137   :  { %v1388_v31 = vpop.f32.mrb[46].mxu0  ;;  %v694_v35 = vmax.f32 %v571_v30, 0.0 }
 0x138   :  { %v697_v33 = vmax.f32 %v1388_v31, 0.0  ;;  %v574_v34 = vpop.f32.mrb[47].mxu0 }
 0x139   :  { %v695_v36 = vmax.f32 %v574_v34, 0.0 }
 0x13a   :  { %v738_v37 = vpack.c.bf16 %v697_v33, %v696_v32 }
 0x13b   :  { %v737_v39 = vpack.c.bf16 %v695_v36, %v694_v35 }
 0x13d   :  { %v1391_v40 = vpop.f32.mrb[48].mxu0 }
 0x13e   :  { %v587_v41 = vpop.f32.mrb[49].mxu0  ;;  %v700_v45 = vmax.f32 %v1391_v40, 0.0 }
 0x13f   :  { %v1392_v44 = vpop.f32.mrb[50].mxu0  ;;  %v698_v48 = vmax.f32 %v587_v41, 0.0  ;;  %v1455_v41 = vld [vmem:[%s1746_s4 + $0x48] sm:$0xff]  }
 0x140   :  { %v701_v46 = vmax.f32 %v1392_v44, 0.0  ;;  %v590_v47 = vpop.f32.mrb[51].mxu0  ;;  %v1456_v44 = vld [vmem:[%s1746_s4 + $0x8] sm:$0xff]  }
 0x141   :  { %v699_v49 = vmax.f32 %v590_v47, 0.0  ;;  %v1459_v47 = vld [vmem:[%s1746_s4 + $0x58] sm:$0xff]  }
 0x142   :  { %v740_v50 = vpack.c.bf16 %v701_v46, %v700_v45  ;;  %v1457_v45 = vld [vmem:[%s1746_s4 + $0x50] sm:$0xff]  }
 0x143   :  { %v739_v51 = vpack.c.bf16 %v699_v49, %v698_v48  ;;  %v1458_v46 = vld [vmem:[%s1746_s4 + $0x10] sm:$0xff]   ;;  %v1460_v48 = vld [vmem:[%s1746_s4 + $0x18] sm:$0xff]   ;;  %v1461_v49 = vld [vmem:[%s1746_s4 + $0x60] sm:$0xff]  }
 0x145   :  { %v1395_v53 = vpop.f32.mrb[52].mxu0  ;;  %1293 = vmatprep.subr.bf16.mxu1 %v739_v51  ;;  %v1463_v51 = vld [vmem:[%s1746_s4 + $0x68] sm:$0xff]  }
 0x146   :  { %v603_v54 = vpop.f32.mrb[53].mxu0  ;;  %1294 = vmatpush3.bf16.msra.mxu1 %v731_v10  ;;  %v704_v52 = vmax.f32 %v1395_v53, 0.0  ;;  %v1464_v53 = vld [vmem:[%s1746_s4 + $0x28] sm:$0xff]  }
 0x147   :  { %v1396_v55 = vpop.f32.mrb[54].mxu0  ;;  %1295 = vmatprep.subr.bf16.mxu1 %v740_v50  ;;  %v702_v58 = vmax.f32 %v603_v54, 0.0  ;;  %v1462_v50 = vld [vmem:[%s1746_s4 + $0x20] sm:$0xff]   ;;  %v1465_v54 = vld [vmem:[%s1746_s4 + $0x70] sm:$0xff]  }
 0x148   :  { %v705_v56 = vmax.f32 %v1396_v55, 0.0  ;;  %v606_v57 = vpop.f32.mrb[55].mxu0  ;;  %v1466_v55 = vld [vmem:[%s1746_s4 + $0x30] sm:$0xff]  }
 0x149   :  { %v703_v59 = vmax.f32 %v606_v57, 0.0  ;;  %v870_v57 = vsub.s32 0, %v1640_v38 }
 0x14a   :  { %v742_v60 = vpack.c.bf16 %v705_v56, %v704_v52  ;;  %1296 = vmatpush3.bf16.msra.mxu1 %v732_v7  ;;  %v1467_v52 = vld [vmem:[%s1746_s4 + $0x78] sm:$0xff]  }
 0x14b   :  { %v741_v61 = vpack.c.bf16 %v703_v59, %v702_v58  ;;  %v1468_v56 = vld [vmem:[%s1746_s4 + $0x38] sm:$0xff]   ;;  %v856_v58 = vld [vmem:[%s1747_s5] ss:$2 sm:$0x3]  ;;  %v874_v59 = vsub.s32 1, %v1640_v38 }
 0x14d   :  { %v1399_v63 = vpop.f32.mrb[56].mxu0  ;;  %1297 = vmatprep.subr.bf16.mxu1 %v741_v61  ;;  %v875_v61 = vrot.slane %v856_v58, %v874_v59 }
 0x14e   :  { %v619_v0 = vpop.f32.mrb[57].mxu0  ;;  %1298 = vmatpush3.bf16.msra.mxu1 %v733_v20  ;;  %v708_v62 = vmax.f32 %v1399_v63, 0.0  ;;  %v1441_v20 = vld [vmem:[%s1745_s3] ss:$8 sps:$4 sm:$0xff]  }
 0x14f   :  { %v1400_v1 = vpop.f32.mrb[58].mxu0  ;;  %1299 = vmatprep.subr.bf16.mxu1 %v742_v60  ;;  %v706_v4 = vmax.f32 %v619_v0, 0.0  ;;  %v871_v60 = vrot.slane %v856_v58, %v870_v57 }
 0x150   :  { %v709_v2 = vmax.f32 %v1400_v1, 0.0  ;;  %v622_v3 = vpop.f32.mrb[59].mxu0 }
 0x151   :  { %v707_v5 = vmax.f32 %v622_v3, 0.0 }
 0x152   :  { %v744_v6 = vpack.c.bf16 %v709_v2, %v708_v62  ;;  %1300 = vmatpush3.bf16.msra.mxu1 %v734_v19  ;;  %v770_v19 = vcombine.high %v1648_v43, %v1648_v43  ;;  %v1444_v43 = vld [vmem:[%s1745_s3 + $0x10] ss:$8 sps:$4 sm:$0xff]  }
 0x153   :  { %v743_v9 = vpack.c.bf16 %v707_v5, %v706_v4 }
 0x155   :  { %v1403_v10 = vpop.f32.mrb[60].mxu0  ;;  %1301 = vmatprep.subr.bf16.mxu1 %v743_v9 }
 0x156   :  { %v635_v8 = vpop.f32.mrb[61].mxu0  ;;  %1302 = vmatpush3.bf16.msra.mxu1 %v735_v28  ;;  %v712_v11 = vmax.f32 %v1403_v10, 0.0 }
 0x157   :  { %v1404_v7 = vpop.f32.mrb[62].mxu0  ;;  %1303 = vmatprep.subr.bf16.mxu1 %v744_v6  ;;  %v710_v14 = vmax.f32 %v635_v8, 0.0  ;;  %v1220_v8 = vld [vmem:[%s1747_s5 + $0x1] ss:$0 sm:$0xff] }
 0x158   :  { %v713_v12 = vmax.f32 %v1404_v7, 0.0  ;;  %v638_v13 = vpop.f32.mrb[63].mxu0 }
 0x159   :  { %v711_v15 = vmax.f32 %v638_v13, 0.0 }
 0x15a   :  { %v746_v16 = vpack.c.bf16 %v713_v12, %v712_v11  ;;  %1304 = vmatpush3.bf16.msra.mxu1 %v736_v27 }
 0x15b   :  { %v745_v17 = vpack.c.bf16 %v711_v15, %v710_v14 }
 0x15d   :  { %1305 = vmatprep.subr.bf16.mxu1 %v745_v17 }
 0x15e   :  { %1306 = vmatpush3.bf16.msra.mxu1 %v737_v39  ;;  %v1454_v39 = vld [vmem:[%s1746_s4] sm:$0xff]  }
 0x15f   :  { %1307 = vmatprep.subr.bf16.mxu1 %v746_v16 }
 0x162   :  { %1308 = vmatpush3.bf16.msra.mxu1 %v738_v37 }
 0x163   :  { %922 = vmatprep.subr.bf16.mxu1 %v1443_v21 }
 0x165   :  { %849 = vmatmul.mubr.bf16.vlgmr.msra.gmra.mrb[4].mxu1 %v770_v19 }
 0x166   :  { %923 = vmatpush1.bf16.msra.mxu1 %v1441_v20  ;;  %954 = vmatprep.mubr.bf16.mxu1 %v1470_v25 }
 0x167   :  { %924 = vmatprep.subr.bf16.mxu1 %v1446_v22 }
 0x16a   :  { %925 = vmatpush1.bf16.msra.mxu1 %v1444_v43 }
 0x16b   :  { %926 = vmatprep.subr.bf16.mxu1 %v1449_v18 }
 0x16e   :  { %927 = vmatpush1.bf16.msra.mxu1 %v1447_v23 }
 0x16f   :  { %928 = vmatprep.subr.bf16.mxu1 %v1452_v24 }
 0x172   :  { %929 = vmatpush1.bf16.msra.mxu1 %v1450_v42 }
 0x173   :  { %1315 = vmatprep.subr.bf16.mxu1 %v1453_v26 }
 0x1f8   :  { %v1287_v27 = vpop.f32.mrb[0].mxu1 }
 0x1f9   :  { %v1288_v28 = vpop.f32.mrb[1].mxu1 }
 0x1fa   :  { %v1289_v29 = vadd.f32 %v1288_v28, %v1287_v27  ;;  %v1290_v30 = vpop.f32.mrb[2].mxu1 }
 0x1fb   :  { %v1291_v31 = vpop.f32.mrb[3].mxu1 }
 0x238   :  { %v1309_v32 = vpop.f32.mrb[4].mxu1 }
 0x239   :  { %v1310_v33 = vpop.f32.mrb[5].mxu1 }
 0x23a   :  { %v1311_v34 = vadd.f32 %v1310_v33, %v1309_v32  ;;  %v1312_v35 = vpop.f32.mrb[6].mxu1 }
 0x23b   :  { %v1313_v36 = vpop.f32.mrb[7].mxu1 }
 0x23c   :  { %v851_v37 = vadd.f32 %v1311_v34, %v1289_v29 }
 0x23e   :  { %v858_v40 = vpack.c.bf16 %v851_v37, %v851_v37 }
 0x240   :  { %1219 = vmatmul.mubr.msk.bf16.vlgmr.msra.gmra.mrb[8].mxu1 %vm918_vm1, %v858_v40 }
 0x241   :  { %1316 = vmatpush3.bf16.msra.mxu1 %v1454_v39 }
 0x242   :  { %1317 = vmatprep.subr.bf16.mxu1 %v1455_v41 }
 0x245   :  { %1318 = vmatpush3.bf16.msra.mxu1 %v1456_v44 }
 0x246   :  { %1319 = vmatprep.subr.bf16.mxu1 %v1457_v45 }
 0x249   :  { %1320 = vmatpush3.bf16.msra.mxu1 %v1458_v46 }
 0x24a   :  { %1321 = vmatprep.subr.bf16.mxu1 %v1459_v47 }
 0x24d   :  { %1322 = vmatpush3.bf16.msra.mxu1 %v1460_v48 }
 0x24e   :  { %1323 = vmatprep.subr.bf16.mxu1 %v1461_v49 }
 0x251   :  { %1324 = vmatpush3.bf16.msra.mxu1 %v1462_v50 }
 0x252   :  { %1325 = vmatprep.subr.bf16.mxu1 %v1463_v51 }
 0x255   :  { %1326 = vmatpush3.bf16.msra.mxu1 %v1464_v53 }
 0x256   :  { %1327 = vmatprep.subr.bf16.mxu1 %v1465_v54 }
 0x259   :  { %1328 = vmatpush3.bf16.msra.mxu1 %v1466_v55 }
 0x25a   :  { %1329 = vmatprep.subr.bf16.mxu1 %v1467_v52 }
 0x25d   :  { %1330 = vmatpush3.bf16.msra.mxu1 %v1468_v56 }
 0x313   :  { %v956_v63 = vpop.f32.mrb[8].mxu1 }
 0x314   :  { %v957_v0 = vadd.f32 %v956_v63, %v871_v60  ;;  %v958_v1 = vpop.f32.mrb[9].mxu1 }
 0x315   :  { %v959_v62 = vadd.f32 %v958_v1, %v875_v61  ;;  %v960_v2 = vpop.f32.mrb[10].mxu1 }
 0x316   :  { %v963_v3 = vmax.f32 %v957_v0, 0.0  ;;  %v961_v4 = vpop.f32.mrb[11].mxu1 }
 0x317   :  { %v964_v5 = vmax.f32 %v959_v62, 0.0 }
 0x318   :  { %v965_v9 = vpack.c.bf16 %v963_v3, %v963_v3 }
 0x319   :  { %v966_v6 = vpack.c.bf16 %v964_v5, %v964_v5 }
 0x31b   :  { %1131 = vmatprep.mubr.bf16.mxu1 %v966_v6 }
 0x31c   :  { %1132 = vmatmul.mubr.bf16.vlgmr.msra.gmra.mrb[12].mxu1 %v965_v9 }
 0x3ef   :  { %v1331_v10 = vpop.f32.mrb[12].mxu1 }
 0x3f0   :  { %v1332_v38 = vpop.f32.mrb[13].mxu1 }
 0x3f1   :  { %v1333_v7 = vadd.f32 %v1332_v38, %v1331_v10  ;;  %v1334_v11 = vpop.f32.mrb[14].mxu1 }
 0x3f2   :  { %v1335_v12 = vpop.f32.mrb[15].mxu1 }
 0x3f3   :  { %v1134_v13 = vadd.f32 %v1333_v7, %v1220_v8 }
 0x3f5   :  { %1139 = vst [vmem:[%s1748_s6] sm:$0x3] %v1134_v13 }

</bundles_post_ra>
